<compile_context>
chip_gen: v7x
topology: tpu7x:2x2x1
jax: 0.10.0
libtpu: 0.0.40
codegen_flags: <defaults>
</compile_context>

<pallas_src>
import functools

import jax
import jax.numpy as jnp
from jax.experimental import pallas as pl
from jax.experimental.pallas import tpu as pltpu

_MIB = 1024 * 1024


def _round_up(x, n):
    return ((x + n - 1) // n) * n


def _sublane_pack(dtype):
    # Sublane packing: 8 rows for 4-byte dtypes, 16 for bf16/f16, 32 for int8/fp8.
    return max(8, 32 // jnp.dtype(dtype).itemsize)


def _tpu_vmem_bytes():
    try:
        return int(pltpu.get_tpu_info().vmem_capacity_bytes)
    except Exception:
        return 64 * _MIB  # conservative fallback (v7x-class)


def _largest_aligned_divisor(n, upper, unit):
    """Largest t <= upper with t % unit == 0 and n % t == 0 (n % unit == 0)."""
    upper = max(unit, (min(upper, n) // unit) * unit)
    for t in range(upper, unit - 1, -unit):
        if n % t == 0:
            return t
    return unit


def _pick_row_tile(m_aligned, tm_max, pack, min_tiles=1):
    """Row tile (multiple of pack, <= tm_max) minimizing padded row count,
    optionally constrained to give at least `min_tiles` grid tiles."""
    upper = min(_round_up(tm_max, pack), _round_up(m_aligned, pack))
    if min_tiles > 1:
        per_tile = -(-m_aligned // min_tiles)
        upper = min(upper, _round_up(per_tile, pack))
    upper = max(upper, pack)
    best_t, best_padded = upper, _round_up(m_aligned, upper)
    for t in range(upper, pack - 1, -pack):
        padded = _round_up(m_aligned, t)
        if padded < best_padded:
            best_t, best_padded = t, padded
    return best_t


def _normalize_params(w1, b1, w2, b2):
    """Return (w1, b1(1,H), w2, b2(1,D)) with D, H padded to multiples of 128.
    Trace-time no-op when already aligned (e.g. via prepare_params())."""
    b1 = b1.reshape(1, -1)
    b2 = b2.reshape(1, -1)
    d, h = w1.shape
    d_pad, h_pad = _round_up(d, 128), _round_up(h, 128)
    if (d, h) == (d_pad, h_pad) and b1.shape[1] == h and b2.shape[1] == d:
        return w1, b1, w2, b2
    # Fallback: padding here costs an extra HBM pass over the weights on every
    # call -- prefer prepare_params(), which does this once at init.
    w1 = jnp.pad(w1, ((0, d_pad - d), (0, h_pad - h)))
    w2 = jnp.pad(w2, ((0, h_pad - h), (0, d_pad - d)))
    b1 = jnp.pad(b1, ((0, 0), (0, h_pad - b1.shape[1])))
    b2 = jnp.pad(b2, ((0, 0), (0, d_pad - b2.shape[1])))
    return w1, b1, w2, b2


def prepare_params(w1, b1, w2, b2, *, weights_dtype=None):
    """Pad weights/biases once, outside the jitted per-call path.

    weights_dtype=jnp.bfloat16 enables the fast bf16-weight path (the kernel
    still accumulates in f32; small numerics difference vs. an f32 reference).
    """
    if weights_dtype is not None:
        w1 = w1.astype(weights_dtype)
        w2 = w2.astype(weights_dtype)
    return _normalize_params(w1, b1, w2, b2)


def _ffn_kernel(x_ref, w1_ref, b1_ref, w2_ref, b2_ref, o_ref, acc_ref):
    # x_ref:  (tm, D)    w1_ref: (D, th)   b1_ref: (1, th)
    # w2_ref: (th, D)    b2_ref: (1, D)    o_ref:  (tm, D)
    # acc_ref: (tm, D) f32, persistent across the H-reduction (j) axis.
    j = pl.program_id(1)

    @pl.when(j == 0)
    def _init():
        # Add b2 exactly once per output tile (accumulator init).
        acc_ref[...] = jnp.broadcast_to(
            b2_ref[...].astype(jnp.float32), acc_ref.shape)

    # First matmul + bias + ReLU for this hidden slab (f32 accumulation).
    # Cast x to the weight dtype so a bf16-weight path runs at bf16 MXU rate.
    h = jnp.dot(x_ref[...].astype(w1_ref.dtype), w1_ref[...],
                preferred_element_type=jnp.float32)
    h = jnp.maximum(h + b1_ref[...].astype(jnp.float32), 0.0)

    # Dropout: inference mode -> identity.
    # TODO(synk): training-mode dropout (pltpu.prng_random_bits mask) not emitted.

    # Second matmul: accumulate this hidden slab's contribution.
    acc_ref[...] += jnp.dot(h.astype(w2_ref.dtype), w2_ref[...],
                            preferred_element_type=jnp.float32)

    @pl.when(j == pl.num_programs(1) - 1)
    def _finalize():
        o_ref[...] = acc_ref[...].astype(o_ref.dtype)


@functools.partial(jax.jit, static_argnames=("tm", "th"))
def feedforward(x, w1, b1, w2, b2, *, tm=None, th=None):
    """x: (..., dim_vector) -> (..., dim_vector).

    w1: (dim_vector, dim_hidden), b1: (dim_hidden,)  [or prepare_params output]
    w2: (dim_hidden, dim_vector), b2: (dim_vector,)
    (weights stored as (in, out), i.e. torch .weight transposed)
    """
    orig_shape = x.shape
    dim_vector = orig_shape[-1]
    m = 1
    for s in orig_shape[:-1]:
        m *= s

    w1p, b1p, w2p, b2p = _normalize_params(w1, b1, w2, b2)
    d_pad, h_pad = w1p.shape

    x_item = jnp.dtype(x.dtype).itemsize
    w_item = jnp.dtype(w1p.dtype).itemsize
    pack = _sublane_pack(x.dtype)

    # Per-generation tuning via VMEM capacity (v5e/v6e ~128 MiB, v7x ~64 MiB/TC).
    vmem_phys = _tpu_vmem_bytes()
    small_vmem = vmem_phys <= 80 * _MIB          # v7x-class chip
    if tm is None:
        tm = 512                                  # weight-slab reuse over rows
    if th is None:
        th = 512 if small_vmem else 1024
    # v7x has 2 TensorCores: prefer >= 2 tiles on the "parallel" row axis.
    min_row_tiles = 2 if small_vmem else 1

    m_aligned = _round_up(m, pack)
    tm_eff = _pick_row_tile(m_aligned, tm, pack, min_row_tiles)
    th_eff = _largest_aligned_divisor(h_pad, _round_up(th, 128), 128)

    # VMEM working-set estimate; shrink buffering / tiles to fit the chip.
    def vmem_est(tm_, th_, xo_bufs):
        return (2 * xo_bufs * tm_ * d_pad * x_item             # x + out tiles
                + 2 * (2 * d_pad * th_ + th_ + d_pad) * w_item  # W1/W2/b1/b2 (x2)
                + tm_ * d_pad * 4)                              # f32 accumulator

    budget = int(0.6 * vmem_phys)
    xo_bufs = 2
    if vmem_est(tm_eff, th_eff, xo_bufs) > budget:
        # x/out block index only changes with i -> single-buffering is nearly
        # free and releases 2*tm*D*itemsize of VMEM (matters on v7x).
        xo_bufs = 1
    while (vmem_est(tm_eff, th_eff, xo_bufs) > budget
           and (th_eff > 128 or tm_eff > pack)):
        if th_eff > 128:
            th_eff = _largest_aligned_divisor(h_pad, th_eff - 128, 128)
        else:
            tm_eff = _pick_row_tile(m_aligned, max(tm_eff // 2, pack), pack,
                                    min_row_tiles)

    m_pad = _round_up(m, tm_eff)
    grid = (m_pad // tm_eff, h_pad // th_eff)

    # Zero-padding of x is exact: padded x columns hit zero W1 rows, padded
    # hidden columns give ReLU(0)=0 against zero W2 rows, padded rows/output
    # columns are sliced off below.
    x2d = jnp.pad(x.reshape(m, dim_vector),
                  ((0, m_pad - m), (0, d_pad - dim_vector)))

    est_bytes = vmem_est(tm_eff, th_eff, xo_bufs)
    vmem_limit = min(max(int(1.4 * est_bytes), 32 * _MIB),
                     int(0.9 * vmem_phys))

    weight_bytes = (w1p.size * w1p.dtype.itemsize
                    + w2p.size * w2p.dtype.itemsize
                    + b1p.size * b1p.dtype.itemsize
                    + b2p.size * b2p.dtype.itemsize)
    cost = pl.CostEstimate(
        flops=4 * m_pad * d_pad * h_pad,               # two matmuls
        transcendentals=0,
        bytes_accessed=(2 * m_pad * d_pad * x_item     # x read + out write
                        + grid[0] * weight_bytes),     # weights streamed per row tile
    )

    xo_kwargs = {} if xo_bufs == 2 else dict(pipeline_mode=pl.Buffered(1))
    x_spec = pl.BlockSpec((tm_eff, d_pad), lambda i, j: (i, 0), **xo_kwargs)
    out_spec = pl.BlockSpec((tm_eff, d_pad), lambda i, j: (i, 0), **xo_kwargs)

    out2d = pl.pallas_call(
        _ffn_kernel,
        out_shape=jax.ShapeDtypeStruct((m_pad, d_pad), x.dtype),
        grid_spec=pltpu.PrefetchScalarGridSpec(
            num_scalar_prefetch=0,
            grid=grid,
            in_specs=[
                x_spec,                                                # x rows
                pl.BlockSpec((d_pad, th_eff), lambda i, j: (0, j)),    # W1 slab
                pl.BlockSpec((1, th_eff), lambda i, j: (0, j)),        # b1 slab
                pl.BlockSpec((th_eff, d_pad), lambda i, j: (j, 0)),    # W2 slab
                pl.BlockSpec((1, d_pad), lambda i, j: (0, 0)),         # b2
            ],
            out_specs=out_spec,
            scratch_shapes=[pltpu.VMEM((tm_eff, d_pad), jnp.float32)],
        ),
        compiler_params=pltpu.CompilerParams(
            dimension_semantics=("parallel", "arbitrary"),
            vmem_limit_bytes=vmem_limit),
        cost_estimate=cost,
    )(x2d, w1p, b1p, w2p, b2p)

    return out2d[:m, :dim_vector].reshape(orig_shape)


def init_params(key, dim_vector, dim_hidden, dtype=jnp.float32):
    """Deterministic init mirroring torch.nn.Linear's U(-1/sqrt(fan_in), ...)."""
    k1, k2, k3, k4 = jax.random.split(key, 4)
    lim1 = 1.0 / (dim_vector ** 0.5)
    lim2 = 1.0 / (dim_hidden ** 0.5)
    # Stored as (in, out) = torch weight transposed.
    w1 = jax.random.uniform(k1, (dim_vector, dim_hidden), dtype, -lim1, lim1)
    b1 = jax.random.uniform(k2, (dim_hidden,), dtype, -lim1, lim1)
    w2 = jax.random.uniform(k3, (dim_hidden, dim_vector), dtype, -lim2, lim2)
    b2 = jax.random.uniform(k4, (dim_vector,), dtype, -lim2, lim2)
    return w1, b1, w2, b2


if __name__ == "__main__":
    batch, seq, dim_vector, dim_hidden = 2, 8, 32, 64

    key = jax.random.PRNGKey(0)
    kx, kp = jax.random.split(key)
    x = jax.random.normal(kx, (batch, seq, dim_vector), jnp.float32)
    w1, b1, w2, b2 = init_params(kp, dim_vector, dim_hidden)

    # Pad (and optionally cast) the weights once, outside the per-call path.
    params = prepare_params(w1, b1, w2, b2)

    out = feedforward(x, *params)
    out = jax.block_until_ready(out)

    # Reference check in plain JAX (same math, eval-mode dropout).
    ref = jnp.maximum(x @ w1 + b1, 0.0) @ w2 + b2
    assert out.shape == x.shape
    assert jnp.allclose(out, ref, atol=1e-5, rtol=1e-5)

    print("KERNEL_OK")
</pallas_src>

<mosaic_0001>
module attributes {stable_mosaic.version = 11 : i64} {
  func.func @_ffn_kernel(%arg0: i32, %arg1: i32, %arg2: memref<8x128xf32, #tpu.memory_space<vmem>>, %arg3: memref<128x128xf32, #tpu.memory_space<vmem>>, %arg4: memref<1x128xf32, #tpu.memory_space<vmem>>, %arg5: memref<128x128xf32, #tpu.memory_space<vmem>>, %arg6: memref<1x128xf32, #tpu.memory_space<vmem>>, %arg7: memref<8x128xf32, #tpu.memory_space<vmem>>, %arg8: memref<8x128xf32, #tpu.memory_space<vmem>>) attributes {dimension_semantics = [#tpu.dimension_semantics<parallel>, #tpu.dimension_semantics<arbitrary>], iteration_bounds = array<i64: 2, 1>, scalar_prefetch = 0 : i64, scratch_operands = 1 : i64, tpu.core_type = #tpu.core_type<tc>, window_params = [{transform_indices = @transform_0, window_bounds = array<i64: 8, 128>}, {transform_indices = @transform_1, window_bounds = array<i64: 128, 128>}, {transform_indices = @transform_2, window_bounds = array<i64: 1, 128>}, {transform_indices = @transform_3, window_bounds = array<i64: 128, 128>}, {pipeline_mode = #tpu.pipeline_mode<synchronous>, transform_indices = @transform_4, window_bounds = array<i64: 1, 128>}, {transform_indices = @transform_5, window_bounds = array<i64: 8, 128>}]} {
    %c0_i32 = arith.constant 0 : i32
    %0 = arith.cmpi eq, %arg1, %c0_i32 : i32
    %1 = arith.extui %0 : i1 to i32
    %c0_i32_0 = arith.constant 0 : i32
    %2 = arith.cmpi ne, %1, %c0_i32_0 : i32
    scf.if %2 {
      %c0_16 = arith.constant 0 : index
      %c0_17 = arith.constant 0 : index
      %19 = vector.load %arg6[%c0_16, %c0_17] : memref<1x128xf32, #tpu.memory_space<vmem>>, vector<1x128xf32>
      %20 = vector.shape_cast %19 : vector<1x128xf32> to vector<1x128xf32>
      %21 = vector.broadcast %20 : vector<1x128xf32> to vector<8x128xf32>
      %c0_18 = arith.constant 0 : index
      %c0_19 = arith.constant 0 : index
      %22 = vector.load %arg8[%c0_18, %c0_19] : memref<8x128xf32, #tpu.memory_space<vmem>>, vector<8x128xf32>
      tpu.vector_store %arg8[%c0_18, %c0_19], %21 {strides = array<i32>} : memref<8x128xf32, #tpu.memory_space<vmem>>, vector<8x128xf32>,
    } else {
    }
    %c0 = arith.constant 0 : index
    %c0_1 = arith.constant 0 : index
    %3 = vector.load %arg2[%c0, %c0_1] : memref<8x128xf32, #tpu.memory_space<vmem>>, vector<8x128xf32>
    %c0_2 = arith.constant 0 : index
    %c0_3 = arith.constant 0 : index
    %4 = vector.load %arg3[%c0_2, %c0_3] : memref<128x128xf32, #tpu.memory_space<vmem>>, vector<128x128xf32>
    %cst = arith.constant dense<0.000000e+00> : vector<8x128xf32>
    %5 = tpu.matmul %3, %4, %cst {dimension_numbers = #tpu.dot_dimension_numbers<[1], [0], [0], [1], [0, 0, 1, 1], [], []>} : vector<8x128xf32>, vector<128x128xf32>, vector<8x128xf32> -> vector<8x128xf32>
    %c0_4 = arith.constant 0 : index
    %c0_5 = arith.constant 0 : index
    %6 = vector.load %arg4[%c0_4, %c0_5] : memref<1x128xf32, #tpu.memory_space<vmem>>, vector<1x128xf32>
    %7 = vector.broadcast %6 : vector<1x128xf32> to vector<8x128xf32>
    %8 = arith.addf %5, %7 : vector<8x128xf32>
    %cst_6 = arith.constant 0.000000e+00 : f32
    %9 = vector.broadcast %cst_6 : f32 to vector<8x128xf32>
    %10 = arith.maximumf %8, %9 : vector<8x128xf32>
    %c0_7 = arith.constant 0 : index
    %c0_8 = arith.constant 0 : index
    %11 = vector.load %arg8[%c0_7, %c0_8] : memref<8x128xf32, #tpu.memory_space<vmem>>, vector<8x128xf32>
    %c0_9 = arith.constant 0 : index
    %c0_10 = arith.constant 0 : index
    %12 = vector.load %arg5[%c0_9, %c0_10] : memref<128x128xf32, #tpu.memory_space<vmem>>, vector<128x128xf32>
    %cst_11 = arith.constant dense<0.000000e+00> : vector<8x128xf32>
    %13 = tpu.matmul %10, %12, %cst_11 {dimension_numbers = #tpu.dot_dimension_numbers<[1], [0], [0], [1], [0, 0, 1, 1], [], []>} : vector<8x128xf32>, vector<128x128xf32>, vector<8x128xf32> -> vector<8x128xf32>
    %14 = arith.addf %11, %13 : vector<8x128xf32>
    %c0_12 = arith.constant 0 : index
    %c0_13 = arith.constant 0 : index
    %15 = vector.load %arg8[%c0_12, %c0_13] : memref<8x128xf32, #tpu.memory_space<vmem>>, vector<8x128xf32>
    tpu.vector_store %arg8[%c0_12, %c0_13], %14 {strides = array<i32>} : memref<8x128xf32, #tpu.memory_space<vmem>>, vector<8x128xf32>,
    %c0_i32_14 = arith.constant 0 : i32
    %16 = arith.cmpi eq, %arg1, %c0_i32_14 : i32
    %17 = arith.extui %16 : i1 to i32
    %c0_i32_15 = arith.constant 0 : i32
    %18 = arith.cmpi ne, %17, %c0_i32_15 : i32
    scf.if %18 {
      %c0_16 = arith.constant 0 : index
      %c0_17 = arith.constant 0 : index
      %19 = vector.load %arg8[%c0_16, %c0_17] : memref<8x128xf32, #tpu.memory_space<vmem>>, vector<8x128xf32>
      %c0_18 = arith.constant 0 : index
      %c0_19 = arith.constant 0 : index
      %20 = vector.load %arg7[%c0_18, %c0_19] : memref<8x128xf32, #tpu.memory_space<vmem>>, vector<8x128xf32>
      tpu.vector_store %arg7[%c0_18, %c0_19], %19 {strides = array<i32>} : memref<8x128xf32, #tpu.memory_space<vmem>>, vector<8x128xf32>,
    } else {
    }
    return
  }
  func.func @transform_0(%arg0: i32, %arg1: i32) -> (i32, i32) {
    %c0_i32 = arith.constant 0 : i32
    %c0_i32_0 = arith.constant 0 : i32
    return %arg0, %c0_i32 : i32, i32
  }
  func.func @transform_1(%arg0: i32, %arg1: i32) -> (i32, i32) {
    %c0_i32 = arith.constant 0 : i32
    %c0_i32_0 = arith.constant 0 : i32
    return %c0_i32, %arg1 : i32, i32
  }
  func.func @transform_2(%arg0: i32, %arg1: i32) -> (i32, i32) {
    %c0_i32 = arith.constant 0 : i32
    %c0_i32_0 = arith.constant 0 : i32
    return %c0_i32, %arg1 : i32, i32
  }
  func.func @transform_3(%arg0: i32, %arg1: i32) -> (i32, i32) {
    %c0_i32 = arith.constant 0 : i32
    %c0_i32_0 = arith.constant 0 : i32
    return %arg1, %c0_i32 : i32, i32
  }
  func.func @transform_4(%arg0: i32, %arg1: i32) -> (i32, i32) {
    %c0_i32 = arith.constant 0 : i32
    %c0_i32_0 = arith.constant 0 : i32
    %c0_i32_1 = arith.constant 0 : i32
    return %c0_i32, %c0_i32_0 : i32, i32
  }
  func.func @transform_5(%arg0: i32, %arg1: i32) -> (i32, i32) {
    %c0_i32 = arith.constant 0 : i32
    %c0_i32_0 = arith.constant 0 : i32
    return %arg0, %c0_i32 : i32, i32
  }
}

</mosaic_0001>

<bundles_post_ra>
// kernel: feedforward.1
= control target key start
LH: loop header
LB: loop body
LE: loop exit
PB: predicated region body
PF: predicated region fallthrough
CT: control target
= control target key end

     0   :  { %10 = vsyncpa [#allocation4], 0  ;;  %s1078_s0 = inlined_call_operand.vmem [shape: f32[16,128], index: 0, kind: input, shape index: {}]   ;;  %s1079_s1 = inlined_call_operand.hbm [shape: f32[128,128], index: 1, kind: input, shape index: {}]   ;;  %s1080_s2 = inlined_call_operand.vmem [shape: f32[1,128], index: 2, kind: input, shape index: {}]   ;;  %s1081_s3 = inlined_call_operand.hbm [shape: f32[128,128], index: 3, kind: input, shape index: {}]   ;;  %s1082_s4 = inlined_call_operand.vmem [shape: f32[1,128], index: 4, kind: input, shape index: {}]   ;;  %s1083_s5 = inlined_call_operand.vmem [shape: f32[16,128], index: 5, kind: output, shape index: {}]  }
   0x1   :  { %11 = vsyncpa [#allocation6], 0  ;;  %s936_s18 = smov 0   ;;  %s938_s19 = smov 0  }
   0x2   :  { %s940_s20 = smov 0  }
   0x3 LB: > { %s593_s21 = sadd.s32 4294967295, %s897_s20   ;;  %s29_s22 = sadd.s32 1, %s893_s19  ;;  %s897_s20 = sphi %s940_s20, %s17_s20   ;;  %s893_s19 = sphi %s938_s19, %s1093_s19   ;;  %s889_s18 = sphi %s936_s18, %s1092_s18  }
   0x4   : > { %p31_p0 = scmp.ge.s32.totalorder %s29_s22, 2  ;;  %p595_p1 = scmp.ge.s32.totalorder %s897_s20, 1 }
   0x5   : > { %p185_p2 = scmp.lt.s32.totalorder %s897_s20, 3  ;;  %p961_p4 = scmp.eq.s32.totalorder %s593_s21, 0 }
   0x6   : > { %s1095_s22 = smov (%p31_p0, %s29_s22), 0  ;;  %s899_s25 = smov [#allocation3]  }
   0x7   : > { %p957_p3 = pnand %p595_p1, %p185_p2  ;;  %s199_s26 = sshll.u32 %s899_s25, 4  ;;  %s200_s26 = int_to_ptr.vmem [resolvable:$true] %s199_s26 }
   0x8   : > { %s1088_s24 = scalar_select %p961_p4, 1, 0 }
   0x9   : > { %s1087_s23 = scalar_select %p957_p3, 1, 0 }
   0xa   : > { %p769_p5 = pneg %p957_p3  ;;  %s900_s28 = smov [#allocation5]  }
   0xb   : > { %s221_s29 = sshll.u32 %s900_s28, 4  ;;  %s811_s7 = scalar_lea.hbm %s1079_s1, 2048  ;;  %s973_s29 = int_to_ptr.vmem [resolvable:$true] %s221_s29 }
   0xc   : > { %p969_p6 = pnand %p961_p4, %p769_p5  ;;  %p812_p7 = scmp.ne.s32.totalorder %s1079_s1, %s811_s7 }
   0xd   : > { %p818_p11 = scmp.lt.u32.totalorder %s811_s7, %s1079_s1 }
   0xe   : > { %p813_p8 = pneg %p969_p6 }
  0x10   : > { %p814_p9 = pnand %p813_p8, %p812_p7 }
  0x12   : > { %p815_p10 = pneg %p814_p9 }
  0x14   : > { %p820_p12 = pnand %p818_p11, %p815_p10 }
  0x16   : > { %823 = shalt.err (!%p820_p12)
}
  0x17   : > { %s824_s12 = scalar_lea.vmem %s200_s26, 2048  ;;  %p832_p2 = scmp.lt.s32.totalorder %s200_s26, %s200_s26 }
  0x18   : > { %p825_p13 = scmp.ne.s32.totalorder %s200_s26, %s824_s12  ;;  %p833_p5 = scmp.lt.s32.totalorder %s824_s12, %s824_s12 }
  0x1a   : > { %p827_p0 = pnand %p825_p13, %p813_p8  ;;  %p834_p4 = por %p833_p5, %p832_p2 }
  0x1c   : > { %p828_p1 = pneg %p827_p0 }
  0x1e   : > { %p835_p3 = pnand %p834_p4, %p828_p1 }
  0x20   : > { %838 = shalt.err (!%p835_p3)
}
  0x21   : > { %s901_s13 = smov 128   ;;  %s902_s14 = smov 8  }
  0x22   : > { %772 = dma.hbm_to_vmem [thread:$0]  (!%p969_p6), %s1079_s1, 2048, %s200_s26, [#allocation4], %s901_s13, %s901_s13, %s902_s14  }
  0x23   : > { %s839_s25 = scalar_lea.hbm %s1081_s3, 2048 }
  0x24   : > { %p840_p7 = scmp.ne.s32.totalorder %s1081_s3, %s839_s25  ;;  %p846_p9 = scmp.lt.u32.totalorder %s839_s25, %s1081_s3 }
  0x26   : > { %p842_p3 = pnand %p840_p7, %p813_p8 }
  0x28   : > { %p843_p4 = pneg %p842_p3 }
  0x2a   : > { %p848_p10 = pnand %p846_p9, %p843_p4 }
  0x2c   : > { %851 = shalt.err (!%p848_p10)
}
  0x2d   : > { %s852_s26 = scalar_lea.vmem %s973_s29, 2048  ;;  %p860_p0 = scmp.lt.s32.totalorder %s973_s29, %s973_s29 }
  0x2e   : > { %p853_p11 = scmp.ne.s32.totalorder %s973_s29, %s852_s26  ;;  %p861_p1 = scmp.lt.s32.totalorder %s852_s26, %s852_s26 }
  0x30   : > { %p855_p12 = pnand %p853_p11, %p813_p8  ;;  %p862_p2 = por %p861_p1, %p860_p0 }
  0x32   : > { %p856_p13 = pneg %p855_p12 }
  0x34   : > { %p863_p5 = pnand %p862_p2, %p856_p13 }
  0x36   : > { %866 = shalt.err (!%p863_p5)
}
  0x37   : > { %775 = dma.hbm_to_vmem [thread:$0]  (!%p969_p6), %s1081_s3, 2048, %s973_s29, [#allocation6], %s901_s13, %s901_s13, %s902_s14  }
  0x38   : > { %p1090_p7 = scmp.ne.s32.totalorder %s1087_s23, 0 }
  0x39   : > { %p1091_p3 = scmp.ne.s32.totalorder (!%p1090_p7), %s1088_s24, 0 }
  0x3a   : > { %247 = sbr.rel (%p1090_p7) target bundleno = 534 (0x216), region = 40 }
  0x41   : > { %880 = dma.done.wait (%p1091_p3), [#allocation4], 2048  }
  0x42   : > { %882 = vsyncadd (%p1091_p3), [#allocation4], 4294965248 }
  0x43   : > { %884 = dma.done.wait (%p1091_p3), [#allocation6], 2048  }
  0x44   : > { %886 = vsyncadd (%p1091_p3), [#allocation6], 4294965248  ;;  %v903_v0 = vmov 0.0|0.0   ;;  %vm904_vm0 = vmmov 0   ;;  %v905_v1 = vmov 0.0   ;;  %v305_v2 = vld [vmem:[#allocation3] sm:$0xff] }
  0x45   : > { %713 = vmatprep.subr.bf16.mxu0 %v903_v0  ;;  %675 = vmatprep.mubr.msk.f32.mxu0 %vm904_vm0, %v905_v1  ;;  %v306_v3 = vld [vmem:[#allocation3 + $0x8] sm:$0xff]  ;;  %v307_v4 = vld [vmem:[#allocation3 + $0x10] sm:$0xff]  ;;  %v308_v6 = vld [vmem:[#allocation3 + $0x18] sm:$0xff]  ;;  %p280_p6 = scmp.lt.s32.totalorder %s889_s18, 1 }
  0x46   : > { %737 = vmatprep.subr.bf16.mxu1 %v903_v0  ;;  %710 = vmatprep.mubr.msk.f32.mxu1 %vm904_vm0, %v905_v1  ;;  %v714_v5 = vpack.c.bf16 %v306_v3, %v305_v2  ;;  %v717_v7 = vpack.c.bf16 %v308_v6, %v307_v4  ;;  %v309_v8 = vld [vmem:[#allocation3 + $0x20] sm:$0xff]  ;;  %v310_v9 = vld [vmem:[#allocation3 + $0x28] sm:$0xff]  ;;  %v402_v12 = vld [vmem:[#allocation5 + $0x10] sm:$0xff] }
  0x47   : > { %v400_v10 = vld [vmem:[#allocation5] sm:$0xff]  ;;  %v401_v11 = vld [vmem:[#allocation5 + $0x8] sm:$0xff]  ;;  %v403_v13 = vld [vmem:[#allocation5 + $0x18] sm:$0xff]  ;;  %v720_v14 = vpack.c.bf16 %v310_v9, %v309_v8  ;;  %s1097_s18 = smov (!%p280_p6, %s889_s18), 1 }
  0x48   : > { %715 = vmatpush3.bf16.msra.mxu0 %v714_v5  ;;  %v738_v15 = vpack.c.bf16 %v401_v11, %v400_v10  ;;  %v311_v16 = vld [vmem:[#allocation3 + $0x30] sm:$0xff]  ;;  %v312_v17 = vld [vmem:[#allocation3 + $0x38] sm:$0xff]  ;;  %v741_v18 = vpack.c.bf16 %v403_v13, %v402_v12  ;;  %v404_v19 = vld [vmem:[#allocation5 + $0x20] sm:$0xff]  ;;  %s603_s23 = sshll.u32 %s1097_s18, 3 }
  0x49   : > { %716 = vmatprep.subr.bf16.mxu0 %v903_v0  ;;  %v405_v20 = vld [vmem:[#allocation5 + $0x28] sm:$0xff]  ;;  %v723_v21 = vpack.c.bf16 %v312_v17, %v311_v16  ;;  %v313_v22 = vld [vmem:[#allocation3 + $0x40] sm:$0xff]  ;;  %v406_v25 = vld [vmem:[#allocation5 + $0x30] sm:$0xff]  ;;  %s283_s29 = scalar_lea.vmem %s1078_s0, %s603_s23  ;;  %s291_s16 = scalar_lea.vmem %s1083_s5, %s603_s23 }
  0x4a   : > { %739 = vmatpush3.bf16.msra.mxu1 %v738_v15  ;;  %v314_v23 = vld [vmem:[#allocation3 + $0x48] sm:$0xff]  ;;  %v744_v24 = vpack.c.bf16 %v405_v20, %v404_v19  ;;  %v407_v26 = vld [vmem:[#allocation5 + $0x38] sm:$0xff]  ;;  %v315_v28 = vld [vmem:[#allocation3 + $0x50] sm:$0xff] }
  0x4b   : > { %740 = vmatprep.subr.bf16.mxu1 %v903_v0  ;;  %v726_v27 = vpack.c.bf16 %v314_v23, %v313_v22  ;;  %v316_v29 = vld [vmem:[#allocation3 + $0x58] sm:$0xff]  ;;  %v747_v30 = vpack.c.bf16 %v407_v26, %v406_v25  ;;  %v408_v31 = vld [vmem:[#allocation5 + $0x40] sm:$0xff]  ;;  %v409_v32 = vld [vmem:[#allocation5 + $0x48] sm:$0xff] }
  0x4c   : > { %718 = vmatpush3.bf16.msra.mxu0 %v717_v7  ;;  %v729_v33 = vpack.c.bf16 %v316_v29, %v315_v28  ;;  %v317_v34 = vld [vmem:[#allocation3 + $0x60] sm:$0xff]  ;;  %v318_v35 = vld [vmem:[#allocation3 + $0x68] sm:$0xff]  ;;  %v750_v36 = vpack.c.bf16 %v409_v32, %v408_v31  ;;  %v410_v37 = vld [vmem:[#allocation5 + $0x50] sm:$0xff] }
  0x4d   : > { %719 = vmatprep.subr.bf16.mxu0 %v903_v0  ;;  %v411_v38 = vld [vmem:[#allocation5 + $0x58] sm:$0xff]  ;;  %v732_v39 = vpack.c.bf16 %v318_v35, %v317_v34  ;;  %v319_v40 = vld [vmem:[#allocation3 + $0x70] sm:$0xff]  ;;  %v412_v43 = vld [vmem:[#allocation5 + $0x60] sm:$0xff] }
  0x4e   : > { %742 = vmatpush3.bf16.msra.mxu1 %v741_v18  ;;  %v320_v41 = vld [vmem:[#allocation3 + $0x78] sm:$0xff]  ;;  %v753_v42 = vpack.c.bf16 %v411_v38, %v410_v37  ;;  %v413_v44 = vld [vmem:[#allocation5 + $0x68] sm:$0xff]  ;;  %v304_v47 = vld [vmem:[%s283_s29] sm:$0xff] }
  0x4f   : > { %743 = vmatprep.subr.bf16.mxu1 %v903_v0  ;;  %v735_v45 = vpack.c.bf16 %v320_v41, %v319_v40  ;;  %v756_v46 = vpack.c.bf16 %v413_v44, %v412_v43  ;;  %v414_v48 = vld [vmem:[#allocation5 + $0x70] sm:$0xff]  ;;  %v415_v49 = vld [vmem:[#allocation5 + $0x78] sm:$0xff]  ;;  %v606_v51 = vld [vmem:[%s1080_s2] ss:$0 sm:$0xff] }
  0x50   : > { %721 = vmatpush3.bf16.msra.mxu0 %v720_v14  ;;  %v759_v50 = vpack.c.bf16 %v415_v49, %v414_v48  ;;  %v605_v56 = vld [vmem:[%s1082_s4] ss:$0 sm:$0xff] }
  0x51   : > { %722 = vmatprep.subr.bf16.mxu0 %v903_v0 }
  0x52   : > { %745 = vmatpush3.bf16.msra.mxu1 %v744_v24 }
  0x53   : > { %746 = vmatprep.subr.bf16.mxu1 %v903_v0 }
  0x54   : > { %724 = vmatpush3.bf16.msra.mxu0 %v723_v21 }
  0x55   : > { %725 = vmatprep.subr.bf16.mxu0 %v903_v0 }
  0x56   : > { %748 = vmatpush3.bf16.msra.mxu1 %v747_v30 }
  0x57   : > { %749 = vmatprep.subr.bf16.mxu1 %v903_v0 }
  0x58   : > { %727 = vmatpush3.bf16.msra.mxu0 %v726_v27 }
  0x59   : > { %728 = vmatprep.subr.bf16.mxu0 %v903_v0 }
  0x5a   : > { %751 = vmatpush3.bf16.msra.mxu1 %v750_v36 }
  0x5b   : > { %752 = vmatprep.subr.bf16.mxu1 %v903_v0 }
  0x5c   : > { %730 = vmatpush3.bf16.msra.mxu0 %v729_v33 }
  0x5d   : > { %731 = vmatprep.subr.bf16.mxu0 %v903_v0 }
  0x5e   : > { %754 = vmatpush3.bf16.msra.mxu1 %v753_v42 }
  0x5f   : > { %755 = vmatprep.subr.bf16.mxu1 %v903_v0 }
  0x60   : > { %733 = vmatpush3.bf16.msra.mxu0 %v732_v39 }
  0x61   : > { %734 = vmatprep.subr.bf16.mxu0 %v903_v0 }
  0x62   : > { %757 = vmatpush3.bf16.msra.mxu1 %v756_v46 }
  0x63   : > { %758 = vmatprep.subr.bf16.mxu1 %v903_v0 }
  0x64   : > { %736 = vmatpush3.bf16.msra.mxu0 %v735_v45 }
  0x66   : > { %760 = vmatpush3.bf16.msra.mxu1 %v759_v50 }
  0x67   : > { %676 = vmatmul.mubr.f32.vlgmr.msra.gmra.mrb[0].mxu0 %v304_v47 }
 0x13a   : > { %v394_v52 = vpop.f32.mrb[0].mxu0 }
 0x13b   : > { %v395_v53 = vadd.f32 %v606_v51, %v394_v52  ;;  %v677_v54 = vpop.f32.mrb[1].mxu0 }
 0x13d   : > { %v398_v55 = vmax.f32 %v395_v53, 0.0 }
 0x13f   : > { %711 = vmatmul.mubr.f32.vlgmr.msra.gmra.mrb[0].mxu1 %v398_v55 }
 0x212   : > { %v482_v57 = vpop.f32.mrb[0].mxu1 }
 0x213   : > { %v486_v58 = vadd.f32 %v605_v56, %v482_v57  ;;  %v712_v59 = vpop.f32.mrb[1].mxu1 }
 0x215   : > { %492 = vst [vmem:[%s291_s16] sm:$0xff] %v486_v58 }
 0x216 PF: > { %s17_s20 = sadd.s32 1, %s897_s20   ;;  %s1092_s18 = smov %s893_s19 }
 0x217   : > { %p14_p8 = scmp.ge.s32.totalorder %s17_s20, 4   ;;  %s1093_s19 = smov %s1095_s22 }
 0x219   :  { %16 = sbr.rel (!%p14_p8) target bundleno = 3 (0x3), region = 92 }
 0x220   :  { %512 = vsyncpa [#allocation4], 1 }
 0x221   :  { %514 = vsyncpa [#allocation4 + $0x1], 1 }
 0x222   :  { %515 = vsyncpa [#allocation6], 1 }

</bundles_post_ra>
